<compile_context>
chip_gen: v6e
topology: v6e:2x2x1
jax: 0.10.0
libtpu: 0.0.40
codegen_flags: <defaults>
</compile_context>

<pallas_src>
import functools

import jax
import jax.numpy as jnp
from jax.experimental import pallas as pl
from jax.experimental.pallas import tpu as pltpu


def _drelu_kernel(params_ref, h_ref, o_ref, *, n_total, tn, n_k):
    # params_ref : SMEM (4,) f32 = [gamma_plus, gamma_minus, theta_plus, theta_minus]
    # h_ref      : VMEM (tb, tn) tile of h
    # o_ref      : VMEM (tb, 1) f32 per-row energy sums (revisited over N axis)
    gamma_plus = params_ref[0]
    gamma_minus = params_ref[1]
    theta_plus = params_ref[2]
    theta_minus = params_ref[3]

    # Always compute/accumulate in f32 (handles bf16 inputs correctly).
    h = h_ref[...].astype(jnp.float32)

    # h_plus * h_minus == 0, so  E = h * (c1 * h + c2)  with sign-selected
    # coefficients (h == 0 contributes 0 either way).
    pos = h > 0.0
    c1 = jnp.where(pos, 0.5 * gamma_plus, 0.5 * gamma_minus)
    c2 = jnp.where(pos, theta_plus, theta_minus)
    energy = h * (c1 * h + c2)

    def row_sum(e):
        # Pure VPU adds + one XLU cross-lane reduce; exact f32, no MXU.
        return jnp.sum(e, axis=-1, keepdims=True)

    def masked_row_sum(e):
        # Zero the padded lanes of the (globally) last N block.  `rem` is a
        # trace-time constant: iota + compare + select + sum, only on that step.
        rem = n_total - (n_k - 1) * tn
        col = jax.lax.broadcasted_iota(jnp.int32, e.shape, 1)
        return jnp.sum(jnp.where(col < rem, e, 0.0), axis=-1, keepdims=True)

    mask_needed = (n_total % tn) != 0          # trace-time constant

    if n_k == 1:
        # Single N step: no accumulator init / revisit needed.
        o_ref[...] = masked_row_sum(energy) if mask_needed else row_sum(energy)
    else:
        k = pl.program_id(1)

        @pl.when(k == 0)
        def _():
            o_ref[...] = jnp.zeros_like(o_ref)

        if mask_needed:
            last = n_k - 1

            @pl.when(k != last)
            def _():
                o_ref[...] += row_sum(energy)

            @pl.when(k == last)
            def _():
                o_ref[...] += masked_row_sum(energy)
        else:
            o_ref[...] += row_sum(energy)


def drelu_forward(h, params, *, tb_cap=8192, _tb=None, _tn=None):
    """DReLULayer.forward.  h: (B, N); params: (4,) [gp, gm, tp, tm].

    Returns the per-row energy sum, shape (B,), float32.
    (_tb/_tn are test-only tile overrides.)
    """
    B, N = h.shape
    params = jnp.asarray(params, jnp.float32)
    isz = jnp.dtype(h.dtype).itemsize

    # ---- generation-aware VMEM budget (byte-based) ----
    try:
        vmem_cap = int(pltpu.get_tpu_info().vmem_capacity_bytes)
    except Exception:
        vmem_cap = 64 * 1024 * 1024            # conservative fallback (v7x per-core)
    # ~96 MiB limit on 128 MiB parts (v5e/v6e), ~48 MiB on 64 MiB parts (v7x).
    vmem_limit = min((vmem_cap * 3) // 4, 96 * 1024 * 1024)
    ws_budget = (vmem_limit * 3) // 4          # headroom for Mosaic-internal scratch
    # Bytes resident per h element: 2 double-buffered input copies + ~4 f32
    # tile-sized elementwise temporaries (upcast, coefficients, energy).
    per_elem = 2 * isz + 16
    budget_elems = max(8 * 128, ws_budget // per_elem)

    # ---- N tile: prefer full rows; otherwise balanced multiples of 128 ----
    if _tn is not None:
        tn = _tn
    elif 8 * N <= budget_elems:
        tn = N
    else:
        max_tn = max(128, ((budget_elems // 8) // 128) * 128)
        nk0 = pl.cdiv(N, max_tn)
        tn = min(max_tn, ((pl.cdiv(N, nk0) + 127) // 128) * 128)
    nk = pl.cdiv(N, tn)

    # ---- batch tile: fill the remaining budget, multiple of 8 ----
    if _tb is not None:
        tb = _tb
    else:
        tb = max(8, min(tb_cap, ((budget_elems // tn) // 8) * 8))
        if tb >= B:
            # Whole batch fits in one tile: keep >= 2 batch tiles when B allows
            # so the "parallel" axis can feed both TensorCores on dual-core parts.
            tb = B if B <= 8 else max(8, ((pl.cdiv(B, 2) + 7) // 8) * 8)
    nb = pl.cdiv(B, tb)

    kernel = functools.partial(_drelu_kernel, n_total=N, tn=tn, n_k=nk)

    out = pl.pallas_call(
        kernel,
        out_shape=jax.ShapeDtypeStruct((nb * tb, 1), jnp.float32),
        grid=(nb, nk),
        in_specs=[
            pl.BlockSpec(memory_space=pltpu.MemorySpace.SMEM),   # scalar params
            pl.BlockSpec((tb, tn), lambda i, k: (i, k)),         # h tile
        ],
        # (tb, 1) per-row accumulator; same block revisited across the N axis,
        # written back to HBM only once per batch tile.
        out_specs=pl.BlockSpec((tb, 1), lambda i, k: (i, 0)),
        compiler_params=pltpu.CompilerParams(
            dimension_semantics=("parallel", "arbitrary"),
            vmem_limit_bytes=vmem_limit,
        ),
    )(params, h)

    # Padded batch rows (undefined values) are discarded here.
    return out[:B, 0]


def drelu_forward_ref(h, params):
    gp, gm, tp, tm = [jnp.float32(params[i]) for i in range(4)]
    hf = h.astype(jnp.float32)
    h_plus = jnp.maximum(hf, 0.0)
    h_minus = jnp.minimum(hf, 0.0)
    e = (h_plus ** 2 * (gp / 2) + h_minus ** 2 * (gm / 2)
         + h_plus * tp + h_minus * tm)
    return e.sum(-1)


if __name__ == "__main__":
    key = jax.random.PRNGKey(0)

    # DReLULayer.__init__ values: gamma_plus=1, gamma_minus=1, theta=0.
    init_params = jnp.array([1.0, 1.0, 0.0, 0.0], dtype=jnp.float32)
    # Generic (trained-like) parameter values exercising the theta terms.
    gen_params = jnp.array([1.3, 0.7, 0.25, -0.4], dtype=jnp.float32)

    def check(B, N, params, dtype=jnp.float32, tb=None, tn=None, atol=2e-3):
        k = jax.random.fold_in(key, B * 131071 + N)
        h = jax.random.normal(k, (B, N), dtype=jnp.float32).astype(dtype)
        out = jax.block_until_ready(drelu_forward(h, params, _tb=tb, _tn=tn))
        ref = drelu_forward_ref(h, params)
        assert out.shape == (B,), out.shape
        assert jnp.allclose(out, ref, rtol=5e-3, atol=atol), (out, ref)

    # Module default layer width is N=100.
    check(16, 100, init_params)                 # full-N tile, two batch tiles
    check(19, 100, gen_params)                  # padded last batch tile (discarded)
    check(19, 384, gen_params, tb=8, tn=128)    # N-axis accumulator, exact N tiling
    check(5, 300, gen_params, tb=8, tn=128)     # B < 8, padded last N block (mask path)
    check(16, 256, gen_params, dtype=jnp.bfloat16, atol=5e-2)  # bf16 in, f32 accumulate

    print("KERNEL_OK")
</pallas_src>

<mosaic_0001>
module attributes {stable_mosaic.version = 11 : i64} {
  func.func @_drelu_kernel(%arg0: i32, %arg1: i32, %arg2: memref<4xf32, #tpu.memory_space<smem>>, %arg3: memref<8x100xf32, #tpu.memory_space<vmem>>, %arg4: memref<8x1xf32, #tpu.memory_space<vmem>>) attributes {dimension_semantics = [#tpu.dimension_semantics<parallel>, #tpu.dimension_semantics<arbitrary>], iteration_bounds = array<i64: 2, 1>, scalar_prefetch = 0 : i64, scratch_operands = 0 : i64, tpu.core_type = #tpu.core_type<tc>, window_params = [{transform_indices = @transform_0, window_bounds = array<i64: 4>}, {transform_indices = @transform_1, window_bounds = array<i64: 8, 100>}, {transform_indices = @transform_2, window_bounds = array<i64: 8, 1>}]} {
    %c0 = arith.constant 0 : index
    %0 = memref.load %arg2[%c0] : memref<4xf32, #tpu.memory_space<smem>>
    %c1 = arith.constant 1 : index
    %1 = memref.load %arg2[%c1] : memref<4xf32, #tpu.memory_space<smem>>
    %c2 = arith.constant 2 : index
    %2 = memref.load %arg2[%c2] : memref<4xf32, #tpu.memory_space<smem>>
    %c3 = arith.constant 3 : index
    %3 = memref.load %arg2[%c3] : memref<4xf32, #tpu.memory_space<smem>>
    %c0_0 = arith.constant 0 : index
    %c0_1 = arith.constant 0 : index
    %4 = vector.load %arg3[%c0_0, %c0_1] : memref<8x100xf32, #tpu.memory_space<vmem>>, vector<8x100xf32>
    %cst = arith.constant 0.000000e+00 : f32
    %5 = vector.broadcast %cst : f32 to vector<8x100xf32>
    %6 = arith.cmpf ogt, %4, %5 : vector<8x100xf32>
    %cst_2 = arith.constant 5.000000e-01 : f32
    %7 = arith.mulf %cst_2, %0 : f32
    %cst_3 = arith.constant 5.000000e-01 : f32
    %8 = arith.mulf %cst_3, %1 : f32
    %9 = vector.broadcast %7 : f32 to vector<8x100xf32>
    %10 = vector.broadcast %8 : f32 to vector<8x100xf32>
    %11 = arith.select %6, %9, %10 : vector<8x100xi1>, vector<8x100xf32>
    %12 = vector.broadcast %2 : f32 to vector<8x100xf32>
    %13 = vector.broadcast %3 : f32 to vector<8x100xf32>
    %14 = arith.select %6, %12, %13 : vector<8x100xi1>, vector<8x100xf32>
    %15 = arith.mulf %11, %4 : vector<8x100xf32>
    %16 = arith.addf %15, %14 : vector<8x100xf32>
    %17 = arith.mulf %4, %16 : vector<8x100xf32>
    %cst_4 = arith.constant dense<0.000000e+00> : vector<8xf32>
    %18 = vector.multi_reduction <add>, %17, %cst_4 [1] : vector<8x100xf32> to vector<8xf32>
    %19 = vector.shape_cast %18 : vector<8xf32> to vector<8x1xf32>
    %c0_5 = arith.constant 0 : index
    %c0_6 = arith.constant 0 : index
    %20 = vector.load %arg4[%c0_5, %c0_6] : memref<8x1xf32, #tpu.memory_space<vmem>>, vector<8x1xf32>
    tpu.vector_store %arg4[%c0_5, %c0_6], %19 {strides = array<i32>} : memref<8x1xf32, #tpu.memory_space<vmem>>, vector<8x1xf32>,
    return
  }
  func.func @transform_0(%arg0: i32, %arg1: i32) -> i32 {
    %c0_i32 = arith.constant 0 : i32
    %c0_i32_0 = arith.constant 0 : i32
    return %c0_i32 : i32
  }
  func.func @transform_1(%arg0: i32, %arg1: i32) -> (i32, i32) {
    %c0_i32 = arith.constant 0 : i32
    return %arg0, %arg1 : i32, i32
  }
  func.func @transform_2(%arg0: i32, %arg1: i32) -> (i32, i32) {
    %c0_i32 = arith.constant 0 : i32
    %c0_i32_0 = arith.constant 0 : i32
    return %arg0, %c0_i32 : i32, i32
  }
}

</mosaic_0001>

<bundles_post_ra>
// kernel: tpu_custom_call.1
= control target key start
LH: loop header
LB: loop body
LE: loop exit
PB: predicated region body
PF: predicated region fallthrough
CT: control target
= control target key end

     0   :  { %7 = vsyncpa [#allocation4], 0  ;;  %s599_s0 = inlined_call_operand.hbm [shape: f32[4], index: 0, kind: input, shape index: {}]   ;;  %s600_s1 = inlined_call_operand.hbm [shape: f32[16,100], index: 1, kind: input, shape index: {}]   ;;  %s601_s2 = inlined_call_operand.vmem [shape: f32[16,1], index: 2, kind: output, shape index: {}]  }
   0x1   :  { %8 = vsyncpa [#allocation3], 0 }
   0x2   :  { %10 = vsyncpa [#allocation3 + $0x1], 0  ;;  %s486_s9 = smov 0   ;;  %s488_s10 = smov 0  }
   0x3   :  { %s490_s11 = smov 0   ;;  %s492_s12 = smov 0  }
   0x4   :  { %s494_s13 = smov 0   ;;  %s496_s14 = smov 0  }
   0x5 LB: > { %s292_s15 = sadd.s32 4294967295, %s467_s14   ;;  %p71_p0 = scmp.ne.s32.totalorder %s451_s10, %s447_s9  ;;  %s467_s14 = sphi %s496_s14, %s16_s14   ;;  %s463_s13 = sphi %s494_s13, %s610_s13   ;;  %s459_s12 = sphi %s492_s12, %s609_s12   ;;  %s455_s11 = sphi %s490_s11, %s608_s11   ;;  %s451_s10 = sphi %s488_s10, %s607_s10   ;;  %s447_s9 = sphi %s486_s9, %s606_s9  }
   0x6   : > { %p516_p1 = scmp.eq.s32.totalorder %s292_s15, 0  ;;  %p294_p2 = scmp.ge.s32.totalorder %s467_s14, 1 }
   0x7   : > { %p108_p3 = scmp.lt.s32.totalorder %s467_s14, 3  ;;  %s28_s19 = sadd.s32 1, %s463_s13 }
   0x8   : > { %p524_p4 = por %p516_p1, %p71_p0  ;;  %p30_p8 = scmp.ge.s32.totalorder %s28_s19, 2 }
   0x9   : > { %p528_p5 = pnand %p294_p2, %p108_p3  ;;  %s58_s20 = sadd.s32 1, %s455_s11 }
   0xa   : > { %p65_p9 = scmp.ne.s32.totalorder %s455_s11, %s451_s10  ;;  %p66_p10 = scmp.eq.s32.totalorder %s467_s14, 0 }
   0xb   : > { %p314_p6 = pneg %p528_p5  ;;  %s469_s21 = smov [#allocation2]  }
   0xc   : > { %s612_s19 = smov (%p30_p8, %s28_s19), 0  ;;  %p67_p11 = por %p66_p10, %p65_p9 }
   0xd   : > { %p315_p7 = pnand %p314_p6, %p516_p1  ;;  %p323_p12 = scmp.lt.s32.totalorder %s467_s14, 2 }
   0xe   : > { %s53_s24 = ssub.s32 %s463_s13, %s612_s19  ;;  %s130_s25 = sand.u32 1, %s455_s11  }
   0xf   : > { %317 = dma.hbm_to_smem (!%p315_p7), %s599_s0, 16, %s469_s21, [#allocation4]  }
  0x10   : > { %p56_p13 = scmp.eq.s32.totalorder %s53_s24, 0  ;;  %s297_s26 = sshll.u32 %s130_s25, 3 }
  0x11   : > { %s298_s27 = sshll.u32 %s463_s13, 7  ;;  %s134_s4 = scalar_lea.vmem [#allocation5], %s297_s26 }
  0x12   : > { %s552_s28 = scalar_select %p56_p13, %s455_s11, %s58_s20  }
  0x13   : > { %s140_s3 = scalar_lea.hbm %s600_s1, %s298_s27  ;;  %s142_s5 = sshll.u32 %s134_s4, 4  ;;  %s143_s5 = int_to_ptr.vmem [resolvable:$true] %s142_s5 }
  0x14   : > { %p557_p0 = pnand %p323_p12, %p67_p11  ;;  %s131_s7 = scalar_lea.sflag [#allocation3], %s130_s25 }
  0x15   : > { %s398_s8 = scalar_lea.vmem %s143_s5, 128  ;;  %s470_s9 = smov [#allocation5]  }
  0x16   : > { %p387_p2 = pneg %p557_p0  ;;  %p399_p3 = scmp.ne.s32.totalorder %s143_s5, %s398_s8 }
  0x17   : > { %s403_s15 = sshll.u32 %s470_s9, 4  ;;  %s404_s15 = int_to_ptr.vmem [resolvable:$false] %s403_s15 }
  0x18   : > { %p401_p6 = pnand %p399_p3, %p387_p2  ;;  %s405_s20 = scalar_lea.vmem %s404_s15, 256 }
  0x19   : > { %p406_p8 = scmp.lt.s32.totalorder %s143_s5, %s404_s15  ;;  %p407_p9 = scmp.lt.s32.totalorder %s405_s20, %s398_s8 }
  0x1a   : > { %p402_p7 = pneg %p401_p6 }
  0x1b   : > { %p408_p10 = por %p407_p9, %p406_p8 }
  0x1d   : > { %p409_p11 = pnand %p408_p10, %p402_p7 }
  0x1f   : > { %412 = shalt.err (!%p409_p11)
}
  0x20   : > { %321 = dma.hbm_to_vmem [thread:$0]  (!%p557_p0), %s140_s3, 128, %s143_s5, %s131_s7  }
  0x21   : > { %151 = sbr.rel (%p528_p5) target bundleno = 202 (0xca), region = 28 }
  0x26   : > { %438 = dma.done.wait (%p516_p1), [#allocation4], 16  }
  0x27   : > { %440 = vsyncadd (%p516_p1), [#allocation4], 4294967280  ;;  %s157_s21 = sand.u32 1, %s451_s10  }
  0x28   : > { %s301_s22 = sshll.u32 %s157_s21, 3  ;;  %s158_s23 = scalar_lea.sflag [#allocation3], %s157_s21 }
  0x29   : > { %s161_s24 = scalar_lea.vmem [#allocation5], %s301_s22 }
  0x2a   : > { %442 = dma.done.wait (%p524_p4), %s158_s23, 128  }
  0x2b   : > { %444 = vsyncadd (%p524_p4), %s158_s23, 4294967168 }
  0x2c   : > { %166 = sfence }
  0x2d   : > { %s186_s18 = sld [smem:[#allocation2]]  ;;  %v190_v0 = vld [vmem:[%s161_s24] sm:$0xff]  ;;  %vm203_vm1 = vcmask 818176   ;;  %p182_p1 = scmp.lt.s32.totalorder %s459_s12, 1  ;;  %vm207_vm2 = vcmask 7168  }
  0x2e   : > { %s303_s25 = sld [smem:[#allocation2 + $0x1]]  ;;  %vm191_vm0 = vcmp.gt.f32.partialorder %v190_v0, 0.0 }
  0x2f   : > { %s304_s26 = sld [smem:[#allocation2 + $0x2]]  ;;  %s614_s12 = smov (!%p182_p1, %s459_s12), 1 }
  0x30   : > { %s305_s27 = sld [smem:[#allocation2 + $0x3]]  ;;  %s302_s17 = sshll.u32 %s614_s12, 3 }
  0x31   : > { %s185_s4 = scalar_lea.vmem %s601_s2, %s302_s17 }
  0x33   : > { %s192_s16 = smul.f32 0.5, %s186_s18 }
  0x34   : > { %s193_s29 = smul.f32 0.5, %s303_s25 }
  0x35   : > { %v194_v1 = vstv %s192_s16  ;;  %v197_v2 = vstv %s304_s26 }
  0x36   : > { %v195_v3 = vstv %s193_s29  ;;  %v198_v4 = vstv %s305_s27 }
  0x37   : > { %v196_v5 = vsel %vm191_vm0, %v194_v1, %v195_v3  ;;  %v199_v6 = vsel %vm191_vm0, %v197_v2, %v198_v4 }
  0x38   : > { %v200_v7 = vmul.f32 %v196_v5, %v190_v0 }
  0x3a   : > { %v201_v8 = vadd.f32 %v200_v7, %v199_v6 }
  0x3c   : > { %v202_v9 = vmul.f32 %v201_v8, %v190_v0 }
  0x3e   : > { %v204_v10 = vsel %vm203_vm1, %v202_v9, 0.0 }
  0x3f   : > { %205 = vadd.xlane.f32.xlu0 %v204_v10 }
  0xc8   : > { %v206_v11 = vpop.xlane.xlu0 %205 }
  0xc9   : > { %208 = vst.msk [vmem:[%s185_s4] sm:$0xff] %vm207_vm2, %v206_v11 }
  0xca PF: > { %s16_s14 = sadd.s32 1, %s467_s14   ;;  %s606_s9 = smov %s451_s10 }
  0xcb   : > { %p13_p4 = scmp.ge.s32.totalorder %s16_s14, 4   ;;  %s607_s10 = smov %s455_s11 }
  0xcc   : > { %s608_s11 = smov %s552_s28  ;;  %s609_s12 = smov %s463_s13 }
  0xcd   : > { %s610_s13 = smov %s612_s19  ;;  %15 = sbr.rel (!%p13_p4) target bundleno = 5 (0x5), region = 73 }
  0xd2   :  { %228 = vsyncpa [#allocation3], 1 }
  0xd3   :  { %230 = vsyncpa [#allocation3 + $0x1], 1 }
  0xd4   :  { %231 = vsyncpa [#allocation4], 1 }
  0xd5   :  { %233 = vsyncpa [#allocation4 + $0x1], 1 }

</bundles_post_ra>
